<compile_context>
chip_gen: v7x
topology: tpu7x:2x2x1
jax: 0.10.0
libtpu: 0.0.40
codegen_flags: <defaults>
</compile_context>

<pallas_src>
import jax
import jax.numpy as jnp
from jax import lax
from jax.experimental import pallas as pl
from jax.experimental.pallas import tpu as pltpu

FEATURE_DIM = 6      # partition_feature_dim
HIDDEN_DIM = 64      # hidden_dim
HIDDEN_PAD = 128     # hidden dim zero-padded to a full lane width
EMBED_DIM = 128      # embedding_dim
LN_EPS = 1e-5        # nn.LayerNorm default eps
MAX_TILE = 512       # rows per grid step (upper bound)

# rows of the packed parameter slab
_ROW_B1, _ROW_B2, _ROW_G2, _ROW_BE2 = 0, 1, 2, 3


def _round_up(x, m):
    return ((x + m - 1) // m) * m


def _choose_tile(batch):
    """Large tiles amortize the ~0.35us/step pipeline overhead; keep the grid
    >= 2 steps when there is enough work so v7x's two TCs are both used."""
    if batch <= 16:
        return 8
    return min(MAX_TILE, _round_up(pl.cdiv(batch, 2), 8))


def _partition_encoder_kernel(x_ref, w1_ref, w2_ref, p_ref, o_ref):
    # x_ref : (TILE, 6)        f32
    # w1_ref: (6, 128)         bf16   (LN1-folded, hidden-padded W1)
    # w2_ref: (128, 128)       bf16   (hidden-padded W2)
    # p_ref : (8, 128)         f32    rows: [b1, b2, ln2_gamma, ln2_beta, 0...]
    # o_ref : (TILE, 128)      f32
    x = x_ref[...].astype(jnp.float32)

    # torch.nan_to_num(x, nan=0.0, posinf=1.0, neginf=-1.0)
    x = jnp.where(jnp.isnan(x), 0.0, x)
    x = jnp.where(x == jnp.inf, 1.0, x)
    x = jnp.where(x == -jnp.inf, -1.0, x)

    # --- LayerNorm over feature dim (gamma/beta folded into W1/b1) ---
    mu = jnp.mean(x, axis=-1, keepdims=True)
    xc = x - mu
    var = jnp.mean(xc * xc, axis=-1, keepdims=True)
    xn = xc * lax.rsqrt(var + LN_EPS)

    # --- Linear(6 -> 128pad) + bias + ReLU ---  (bf16 MXU, f32 accumulate)
    h = jnp.dot(xn.astype(jnp.bfloat16), w1_ref[...],
                preferred_element_type=jnp.float32)
    h = jnp.maximum(h + p_ref[_ROW_B1:_ROW_B1 + 1, :], 0.0)
    # Dropout(p=0.1) is identity in eval / inference mode.

    # --- Linear(128pad -> 128) + bias ---
    e = jnp.dot(h.astype(jnp.bfloat16), w2_ref[...],
                preferred_element_type=jnp.float32)
    e = e + p_ref[_ROW_B2:_ROW_B2 + 1, :]

    # --- output LayerNorm over embedding dim (128) ---
    mu2 = jnp.mean(e, axis=-1, keepdims=True)
    ec = e - mu2
    var2 = jnp.mean(ec * ec, axis=-1, keepdims=True)
    en = ec * lax.rsqrt(var2 + LN_EPS)
    o_ref[...] = (en * p_ref[_ROW_G2:_ROW_G2 + 1, :]
                  + p_ref[_ROW_BE2:_ROW_BE2 + 1, :]).astype(o_ref.dtype)


def prepare_params(params):
    """One-time host-side precompute: fold LN1 into W1/b1, zero-pad the hidden
    dim 64->128, cast matmul weights to bf16, pack small vectors into a slab."""
    g1, be1, w1, b1, w2, b2, g2, be2 = params
    # Fold LayerNorm(6) affine into the first linear layer:
    #   (xn*g1 + be1) @ W1 + b1 == xn @ (diag(g1) @ W1) + (be1 @ W1 + b1)
    w1f = g1.reshape(-1, 1) * w1                      # (6, 64)
    b1f = be1 @ w1 + b1                               # (1, 64)
    # Zero-pad hidden 64 -> 128 (lane-dense intermediate; padded cols are 0).
    w1p = jnp.pad(w1f, ((0, 0), (0, HIDDEN_PAD - HIDDEN_DIM)))
    b1p = jnp.pad(b1f, ((0, 0), (0, HIDDEN_PAD - HIDDEN_DIM)))
    w2p = jnp.pad(w2, ((0, HIDDEN_PAD - HIDDEN_DIM), (0, 0)))
    slab = jnp.concatenate([b1p, b2, g2, be2], axis=0)          # (4, 128)
    slab = jnp.pad(slab, ((0, 8 - slab.shape[0]), (0, 0)))      # (8, 128)
    return (w1p.astype(jnp.bfloat16),
            w2p.astype(jnp.bfloat16),
            slab.astype(jnp.float32))


@jax.jit
def partition_encoder_forward(x, prepared):
    """x: [B, 6] float32 -> embeddings [B, 128] float32."""
    w1, w2, slab = prepared
    B, F = x.shape
    assert F == FEATURE_DIM

    tile = _choose_tile(B)
    b_pad = _round_up(B, tile)
    if b_pad != B:
        x = jnp.pad(x, ((0, b_pad - B), (0, 0)))
    grid = (b_pad // tile,)

    const = lambda shape: pl.BlockSpec(shape, lambda i: (0, 0))
    out = pl.pallas_call(
        _partition_encoder_kernel,
        out_shape=jax.ShapeDtypeStruct((b_pad, EMBED_DIM), jnp.float32),
        grid_spec=pltpu.PrefetchScalarGridSpec(
            num_scalar_prefetch=0,
            grid=grid,
            in_specs=[
                pl.BlockSpec((tile, FEATURE_DIM), lambda i: (i, 0)),  # x
                const((FEATURE_DIM, HIDDEN_PAD)),                     # W1 (bf16)
                const((HIDDEN_PAD, EMBED_DIM)),                       # W2 (bf16)
                const((8, EMBED_DIM)),                                # param slab
            ],
            out_specs=pl.BlockSpec((tile, EMBED_DIM), lambda i: (i, 0)),
        ),
        compiler_params=pltpu.CompilerParams(
            dimension_semantics=("parallel",)),
    )(x, w1, w2, slab)
    return out[:B]


def init_params(key):
    """Parameters matching PartitionEncoder.__init__ defaults.
    Linear weights: xavier_uniform_, biases: zeros, LayerNorm: gamma=1, beta=0.
    Stored as [in, out] (transpose of PyTorch's [out, in])."""
    k1, k2 = jax.random.split(key)

    def xavier(k, fan_in, fan_out):
        bound = jnp.sqrt(6.0 / (fan_in + fan_out))
        return jax.random.uniform(
            k, (fan_in, fan_out), jnp.float32, minval=-bound, maxval=bound)

    g1 = jnp.ones((1, FEATURE_DIM), jnp.float32)
    be1 = jnp.zeros((1, FEATURE_DIM), jnp.float32)
    w1 = xavier(k1, FEATURE_DIM, HIDDEN_DIM)
    b1 = jnp.zeros((1, HIDDEN_DIM), jnp.float32)
    w2 = xavier(k2, HIDDEN_DIM, EMBED_DIM)
    b2 = jnp.zeros((1, EMBED_DIM), jnp.float32)
    g2 = jnp.ones((1, EMBED_DIM), jnp.float32)
    be2 = jnp.zeros((1, EMBED_DIM), jnp.float32)
    return (g1, be1, w1, b1, w2, b2, g2, be2)


def reference_forward(x, params, mxu_dtype=jnp.float32):
    """Pure-JAX reference mirroring the PyTorch module. `mxu_dtype=bfloat16`
    reproduces the kernel's matmul-operand precision for a tight check."""
    g1, be1, w1, b1, w2, b2, g2, be2 = params
    x = jnp.where(jnp.isnan(x), 0.0, x)
    x = jnp.where(x == jnp.inf, 1.0, x)
    x = jnp.where(x == -jnp.inf, -1.0, x)
    mu = x.mean(-1, keepdims=True)
    var = ((x - mu) ** 2).mean(-1, keepdims=True)
    xn = (x - mu) / jnp.sqrt(var + LN_EPS) * g1 + be1
    h = jnp.dot(xn.astype(mxu_dtype), w1.astype(mxu_dtype),
                preferred_element_type=jnp.float32) + b1
    h = jnp.maximum(h, 0.0)
    e = jnp.dot(h.astype(mxu_dtype), w2.astype(mxu_dtype),
                preferred_element_type=jnp.float32) + b2
    mu2 = e.mean(-1, keepdims=True)
    var2 = ((e - mu2) ** 2).mean(-1, keepdims=True)
    return (e - mu2) / jnp.sqrt(var2 + LN_EPS) * g2 + be2


if __name__ == "__main__":
    key = jax.random.PRNGKey(0)
    pkey, xkey = jax.random.split(key)
    params = init_params(pkey)
    prepared = prepare_params(params)

    # num_partitions = 16 rows of 6 physical partition features each.
    x = jax.random.normal(xkey, (16, FEATURE_DIM), jnp.float32)
    # Exercise the NaN / Inf sanitization path.
    x = x.at[0, 0].set(jnp.nan).at[1, 1].set(jnp.inf).at[2, 2].set(-jnp.inf)

    out = partition_encoder_forward(x, prepared)
    out = jax.block_until_ready(out)
    assert out.shape == (16, EMBED_DIM)

    # Tight check against a matched-precision (bf16 MXU operand) reference.
    ref_bf16 = reference_forward(x, params, mxu_dtype=jnp.bfloat16)
    assert jnp.allclose(out, ref_bf16, atol=2e-3, rtol=2e-3)
    # Loose sanity check against the full-f32 reference.
    ref_f32 = reference_forward(x, params)
    assert jnp.allclose(out, ref_f32, atol=5e-2, rtol=5e-2)

    print("KERNEL_OK")
</pallas_src>

<mosaic_0001>
module attributes {stable_mosaic.version = 11 : i64} {
  func.func @_partition_encoder_kernel(%arg0: i32, %arg1: memref<8x6xf32, #tpu.memory_space<vmem>>, %arg2: memref<6x128xbf16, #tpu.memory_space<vmem>>, %arg3: memref<128x128xbf16, #tpu.memory_space<vmem>>, %arg4: memref<8x128xf32, #tpu.memory_space<vmem>>, %arg5: memref<8x128xf32, #tpu.memory_space<vmem>>) attributes {dimension_semantics = [#tpu.dimension_semantics<parallel>], iteration_bounds = array<i64: 2>, scalar_prefetch = 0 : i64, scratch_operands = 0 : i64, tpu.core_type = #tpu.core_type<tc>, window_params = [{transform_indices = @transform_0, window_bounds = array<i64: 8, 6>}, {pipeline_mode = #tpu.pipeline_mode<synchronous>, transform_indices = @transform_1, window_bounds = array<i64: 6, 128>}, {pipeline_mode = #tpu.pipeline_mode<synchronous>, transform_indices = @transform_2, window_bounds = array<i64: 128, 128>}, {pipeline_mode = #tpu.pipeline_mode<synchronous>, transform_indices = @transform_3, window_bounds = array<i64: 8, 128>}, {transform_indices = @transform_4, window_bounds = array<i64: 8, 128>}]} {
    %c0 = arith.constant 0 : index
    %c0_0 = arith.constant 0 : index
    %0 = vector.load %arg1[%c0, %c0_0] : memref<8x6xf32, #tpu.memory_space<vmem>>, vector<8x6xf32>
    %1 = arith.cmpf one, %0, %0 : vector<8x6xf32>
    %cst = arith.constant 0.000000e+00 : f32
    %2 = vector.broadcast %cst : f32 to vector<8x6xf32>
    %3 = arith.select %1, %2, %0 : vector<8x6xi1>, vector<8x6xf32>
    %cst_1 = arith.constant 0x7F800000 : f32
    %4 = vector.broadcast %cst_1 : f32 to vector<8x6xf32>
    %5 = arith.cmpf oeq, %3, %4 : vector<8x6xf32>
    %cst_2 = arith.constant 1.000000e+00 : f32
    %6 = vector.broadcast %cst_2 : f32 to vector<8x6xf32>
    %7 = arith.select %5, %6, %3 : vector<8x6xi1>, vector<8x6xf32>
    %cst_3 = arith.constant 0xFF800000 : f32
    %8 = vector.broadcast %cst_3 : f32 to vector<8x6xf32>
    %9 = arith.cmpf oeq, %7, %8 : vector<8x6xf32>
    %cst_4 = arith.constant -1.000000e+00 : f32
    %10 = vector.broadcast %cst_4 : f32 to vector<8x6xf32>
    %11 = arith.select %9, %10, %7 : vector<8x6xi1>, vector<8x6xf32>
    %cst_5 = arith.constant dense<0.000000e+00> : vector<8xf32>
    %12 = vector.multi_reduction <add>, %11, %cst_5 [1] : vector<8x6xf32> to vector<8xf32>
    %13 = vector.shape_cast %12 : vector<8xf32> to vector<8x1xf32>
    %cst_6 = arith.constant 6.000000e+00 : f32
    %14 = vector.broadcast %cst_6 : f32 to vector<8x1xf32>
    %15 = arith.divf %13, %14 : vector<8x1xf32>
    %16 = vector.broadcast %15 : vector<8x1xf32> to vector<8x6xf32>
    %17 = arith.subf %11, %16 : vector<8x6xf32>
    %18 = arith.mulf %17, %17 : vector<8x6xf32>
    %cst_7 = arith.constant dense<0.000000e+00> : vector<8xf32>
    %19 = vector.multi_reduction <add>, %18, %cst_7 [1] : vector<8x6xf32> to vector<8xf32>
    %20 = vector.shape_cast %19 : vector<8xf32> to vector<8x1xf32>
    %cst_8 = arith.constant 6.000000e+00 : f32
    %21 = vector.broadcast %cst_8 : f32 to vector<8x1xf32>
    %22 = arith.divf %20, %21 : vector<8x1xf32>
    %cst_9 = arith.constant 9.99999974E-6 : f32
    %23 = vector.broadcast %cst_9 : f32 to vector<8x1xf32>
    %24 = arith.addf %22, %23 : vector<8x1xf32>
    %25 = math.rsqrt %24 : vector<8x1xf32>
    %26 = vector.broadcast %25 : vector<8x1xf32> to vector<8x6xf32>
    %27 = arith.mulf %17, %26 : vector<8x6xf32>
    %28 = arith.truncf %27 : vector<8x6xf32> to vector<8x6xbf16>
    %c0_10 = arith.constant 0 : index
    %c0_11 = arith.constant 0 : index
    %29 = vector.load %arg2[%c0_10, %c0_11] : memref<6x128xbf16, #tpu.memory_space<vmem>>, vector<6x128xbf16>
    %cst_12 = arith.constant dense<0.000000e+00> : vector<8x128xf32>
    %30 = tpu.matmul %28, %29, %cst_12 {dimension_numbers = #tpu.dot_dimension_numbers<[1], [0], [0], [1], [0, 0, 1, 1], [], []>} : vector<8x6xbf16>, vector<6x128xbf16>, vector<8x128xf32> -> vector<8x128xf32>
    %c0_13 = arith.constant 0 : index
    %c0_14 = arith.constant 0 : index
    %31 = vector.load %arg4[%c0_13, %c0_14] : memref<8x128xf32, #tpu.memory_space<vmem>>, vector<1x128xf32>
    %32 = vector.broadcast %31 : vector<1x128xf32> to vector<8x128xf32>
    %33 = arith.addf %30, %32 : vector<8x128xf32>
    %cst_15 = arith.constant 0.000000e+00 : f32
    %34 = vector.broadcast %cst_15 : f32 to vector<8x128xf32>
    %35 = arith.maximumf %33, %34 : vector<8x128xf32>
    %36 = arith.truncf %35 : vector<8x128xf32> to vector<8x128xbf16>
    %c0_16 = arith.constant 0 : index
    %c0_17 = arith.constant 0 : index
    %37 = vector.load %arg3[%c0_16, %c0_17] : memref<128x128xbf16, #tpu.memory_space<vmem>>, vector<128x128xbf16>
    %cst_18 = arith.constant dense<0.000000e+00> : vector<8x128xf32>
    %38 = tpu.matmul %36, %37, %cst_18 {dimension_numbers = #tpu.dot_dimension_numbers<[1], [0], [0], [1], [0, 0, 1, 1], [], []>} : vector<8x128xbf16>, vector<128x128xbf16>, vector<8x128xf32> -> vector<8x128xf32>
    %c1 = arith.constant 1 : index
    %c0_19 = arith.constant 0 : index
    %39 = vector.load %arg4[%c1, %c0_19] : memref<8x128xf32, #tpu.memory_space<vmem>>, vector<1x128xf32>
    %40 = vector.broadcast %39 : vector<1x128xf32> to vector<8x128xf32>
    %41 = arith.addf %38, %40 : vector<8x128xf32>
    %cst_20 = arith.constant dense<0.000000e+00> : vector<8xf32>
    %42 = vector.multi_reduction <add>, %41, %cst_20 [1] : vector<8x128xf32> to vector<8xf32>
    %43 = vector.shape_cast %42 : vector<8xf32> to vector<8x1xf32>
    %cst_21 = arith.constant 1.280000e+02 : f32
    %44 = vector.broadcast %cst_21 : f32 to vector<8x1xf32>
    %45 = arith.divf %43, %44 : vector<8x1xf32>
    %46 = vector.broadcast %45 : vector<8x1xf32> to vector<8x128xf32>
    %47 = arith.subf %41, %46 : vector<8x128xf32>
    %48 = arith.mulf %47, %47 : vector<8x128xf32>
    %cst_22 = arith.constant dense<0.000000e+00> : vector<8xf32>
    %49 = vector.multi_reduction <add>, %48, %cst_22 [1] : vector<8x128xf32> to vector<8xf32>
    %50 = vector.shape_cast %49 : vector<8xf32> to vector<8x1xf32>
    %cst_23 = arith.constant 1.280000e+02 : f32
    %51 = vector.broadcast %cst_23 : f32 to vector<8x1xf32>
    %52 = arith.divf %50, %51 : vector<8x1xf32>
    %cst_24 = arith.constant 9.99999974E-6 : f32
    %53 = vector.broadcast %cst_24 : f32 to vector<8x1xf32>
    %54 = arith.addf %52, %53 : vector<8x1xf32>
    %55 = math.rsqrt %54 : vector<8x1xf32>
    %56 = vector.broadcast %55 : vector<8x1xf32> to vector<8x128xf32>
    %57 = arith.mulf %47, %56 : vector<8x128xf32>
    %c2 = arith.constant 2 : index
    %c0_25 = arith.constant 0 : index
    %58 = vector.load %arg4[%c2, %c0_25] : memref<8x128xf32, #tpu.memory_space<vmem>>, vector<1x128xf32>
    %59 = vector.broadcast %58 : vector<1x128xf32> to vector<8x128xf32>
    %60 = arith.mulf %57, %59 : vector<8x128xf32>
    %c3 = arith.constant 3 : index
    %c0_26 = arith.constant 0 : index
    %61 = vector.load %arg4[%c3, %c0_26] : memref<8x128xf32, #tpu.memory_space<vmem>>, vector<1x128xf32>
    %62 = vector.broadcast %61 : vector<1x128xf32> to vector<8x128xf32>
    %63 = arith.addf %60, %62 : vector<8x128xf32>
    %c0_27 = arith.constant 0 : index
    %c0_28 = arith.constant 0 : index
    %64 = vector.load %arg5[%c0_27, %c0_28] : memref<8x128xf32, #tpu.memory_space<vmem>>, vector<8x128xf32>
    tpu.vector_store %arg5[%c0_27, %c0_28], %63 {strides = array<i32>} : memref<8x128xf32, #tpu.memory_space<vmem>>, vector<8x128xf32>,
    return
  }
  func.func @transform_0(%arg0: i32) -> (i32, i32) {
    %c0_i32 = arith.constant 0 : i32
    %c0_i32_0 = arith.constant 0 : i32
    return %arg0, %c0_i32 : i32, i32
  }
  func.func @transform_1(%arg0: i32) -> (i32, i32) {
    %c0_i32 = arith.constant 0 : i32
    %c0_i32_0 = arith.constant 0 : i32
    %c0_i32_1 = arith.constant 0 : i32
    return %c0_i32, %c0_i32_0 : i32, i32
  }
  func.func @transform_2(%arg0: i32) -> (i32, i32) {
    %c0_i32 = arith.constant 0 : i32
    %c0_i32_0 = arith.constant 0 : i32
    %c0_i32_1 = arith.constant 0 : i32
    return %c0_i32, %c0_i32_0 : i32, i32
  }
  func.func @transform_3(%arg0: i32) -> (i32, i32) {
    %c0_i32 = arith.constant 0 : i32
    %c0_i32_0 = arith.constant 0 : i32
    %c0_i32_1 = arith.constant 0 : i32
    return %c0_i32, %c0_i32_0 : i32, i32
  }
  func.func @transform_4(%arg0: i32) -> (i32, i32) {
    %c0_i32 = arith.constant 0 : i32
    %c0_i32_0 = arith.constant 0 : i32
    return %arg0, %c0_i32 : i32, i32
  }
}

</mosaic_0001>

<bundles_post_ra>
// kernel: partition_encoder_forward.1
= control target key start
LH: loop header
LB: loop body
LE: loop exit
PB: predicated region body
PF: predicated region fallthrough
CT: control target
= control target key end

     0   :  { %9 = vsyncpa [#allocation3], 0  ;;  %s914_s0 = inlined_call_operand.vmem [shape: f32[16,6], index: 0, kind: input, shape index: {}]   ;;  %s915_s1 = inlined_call_operand.vmem [shape: bf16[6,128], index: 1, kind: input, shape index: {}]   ;;  %s916_s2 = inlined_call_operand.hbm [shape: bf16[128,128], index: 2, kind: input, shape index: {}]   ;;  %s917_s3 = inlined_call_operand.vmem [shape: f32[8,128], index: 3, kind: input, shape index: {}]   ;;  %s918_s4 = inlined_call_operand.hbm [shape: f32[16,128], index: 4, kind: output, shape index: {}]  }
   0x1   :  { %10 = vsyncpa [#allocation4], 0 }
   0x2   :  { %12 = vsyncpa [#allocation4 + $0x1], 0  ;;  %s761_s15 = smov 0   ;;  %s763_s16 = smov 0  }
   0x3   :  { %s765_s17 = smov 0   ;;  %s767_s18 = smov 0  }
   0x4 LB: > { %s782_s19 = sadd.s32 4294967295, %s728_s18   ;;  %s506_s20 = sadd.s32 4294967294, %s728_s18   ;;  %s728_s18 = sphi %s767_s18, %s934_s18   ;;  %s724_s17 = sphi %s765_s17, %s933_s17   ;;  %s720_s16 = sphi %s763_s16, %s932_s16   ;;  %s716_s15 = sphi %s761_s15, %s931_s15  }
   0x5   : > { %s786_s21 = sadd.s32 1, %s728_s18   ;;  %s114_s22 = sadd.s32 1, %s724_s17 }
   0x6   : > { %s111_s23 = ssub.s32 %s728_s18, %s786_s21  ;;  %p124_p0 = scmp.ne.s32.totalorder %s724_s17, %s720_s16 }
   0x7   : > { %p112_p1 = scmp.eq.s32.totalorder %s111_s23, 0  ;;  %p125_p2 = scmp.eq.s32.totalorder %s782_s19, 1 }
   0x8   : > { %p130_p3 = scmp.ne.s32.totalorder %s720_s16, %s716_s15  ;;  %p131_p4 = scmp.eq.s32.totalorder %s506_s20, 1 }
   0x9   : > { %s797_s24 = scalar_select %p112_p1, %s724_s17, %s114_s22  }
   0xa   : > { %p799_p5 = por %p125_p2, %p124_p0  ;;  %p803_p6 = por %p131_p4, %p130_p3 }
   0xb   : > { %p507_p7 = scmp.ge.s32.totalorder %s728_s18, 1  ;;  %p138_p8 = scmp.lt.s32.totalorder %s728_s18, 3 }
   0xc   : > { %s922_s25 = scalar_select %p799_p5, 1, 0 }
   0xd   : > { %s923_s26 = scalar_select %p803_p6, 1, 0 }
   0xe   : > { %p919_p9 = scmp.eq.s32.totalorder %s782_s19, 0  ;;  %p810_p10 = pnand %p507_p7, %p138_p8 }
   0xf   : > { %s730_s28 = smov [#allocation2]   ;;  %s634_s7 = scalar_lea.hbm %s916_s2, 1024 }
  0x10   : > { %s924_s27 = scalar_select %p810_p10, 1, 0 }
  0x11   : > { %s153_s29 = sshll.u32 %s730_s28, 4  ;;  %p574_p11 = pneg %p810_p10  ;;  %s154_s29 = int_to_ptr.vmem [resolvable:$true] %s153_s29 }
  0x12   : > { %p635_p13 = scmp.ne.s32.totalorder %s916_s2, %s634_s7  ;;  %p641_p3 = scmp.lt.u32.totalorder %s634_s7, %s916_s2 }
  0x13   : > { %p818_p12 = pnand %p919_p9, %p574_p11 }
  0x15   : > { %p636_p0 = pneg %p818_p12 }
  0x17   : > { %p637_p1 = pnand %p636_p0, %p635_p13 }
  0x19   : > { %p638_p2 = pneg %p637_p1 }
  0x1b   : > { %p643_p4 = pnand %p641_p3, %p638_p2 }
  0x1d   : > { %646 = shalt.err (!%p643_p4)
}
  0x1e   : > { %s647_s12 = scalar_lea.vmem %s154_s29, 1024  ;;  %p655_p9 = scmp.lt.s32.totalorder %s154_s29, %s154_s29 }
  0x1f   : > { %p648_p7 = scmp.ne.s32.totalorder %s154_s29, %s647_s12  ;;  %p656_p6 = scmp.lt.s32.totalorder %s647_s12, %s647_s12 }
  0x21   : > { %p650_p8 = pnand %p648_p7, %p636_p0  ;;  %p657_p5 = por %p656_p6, %p655_p9 }
  0x23   : > { %p651_p11 = pneg %p650_p8 }
  0x25   : > { %p658_p10 = pnand %p657_p5, %p651_p11 }
  0x27   : > { %661 = shalt.err (!%p658_p10)
}
  0x28   : > { %s731_s13 = smov 64   ;;  %s732_s14 = smov 4  }
  0x29   : > { %577 = dma.hbm_to_vmem [thread:$0]  (!%p818_p12), %s916_s2, 1024, %s154_s29, [#allocation3], %s731_s13, %s731_s13, %s732_s14  }
  0x2a   : > { %p926_p13 = scmp.ne.s32.totalorder %s924_s27, 0 }
  0x2b   : > { %p927_p1 = scmp.eq.s32.totalorder (!%p926_p13), %s782_s19, 0 }
  0x2c   : > { %179 = sbr.rel (%p926_p13) target bundleno = 1133 (0x46d), region = 36 }
  0x33   : > { %707 = dma.done.wait (%p927_p1), [#allocation3], 1024   ;;  %p928_p0 = pmov %p927_p1 }
  0x34   : > { %p204_p5 = scmp.lt.s32.totalorder %s782_s19, 1  ;;  %vm216_vm2 = vcmask 48128   ;;  %v232_v10 = vld [vmem:[%s915_s1] sm:$0x7]  ;;  %vm241_vm4 = vcmask 1042432   ;;  %v733_v11 = vmov 0.0  }
  0x35   : > { %709 = vsyncadd (%p928_p0), [#allocation3], 4294966272  ;;  %542 = vmatprep.subr.bf16.mxu0 %v733_v11  ;;  %v243_v12 = vsel %vm241_vm4, %v232_v10, 0  ;;  %vm734_vm5 = vmmov 0   ;;  %548 = vmatprep.subr.bf16.mxu1 %v733_v11  ;;  %v622_v13 = vld [vmem:[#allocation2] sm:$0xff]   ;;  %v623_v14 = vld [vmem:[#allocation2 + $0x8] sm:$0xff]  }
  0x36   : > { %s205_s23 = scalar_select %p204_p5, %s782_s19, 1  ;;  %544 = vmatprep.mubr.msk.bf16.mxu0 %vm734_vm5, %v733_v11  ;;  %543 = vmatpush3.bf16.msra.mxu0 %v243_v12  ;;  %v624_v15 = vld [vmem:[#allocation2 + $0x10] sm:$0xff]   ;;  %v625_v16 = vld [vmem:[#allocation2 + $0x18] sm:$0xff]   ;;  %v626_v17 = vld [vmem:[#allocation2 + $0x20] sm:$0xff]  }
  0x37   : > { %564 = vmatprep.mubr.msk.bf16.mxu1 %vm734_vm5, %v733_v11  ;;  %549 = vmatpush3.bf16.msra.mxu1 %v622_v13  ;;  %v627_v18 = vld [vmem:[#allocation2 + $0x28] sm:$0xff]   ;;  %v628_v25 = vld [vmem:[#allocation2 + $0x30] sm:$0xff]   ;;  %v629_v26 = vld [vmem:[#allocation2 + $0x38] sm:$0xff]   ;;  %s201_s11 = sand.u32 1, %s720_s16   ;;  %p929_p9 = scmp.ne.s32.totalorder %s922_s25, 0 }
  0x38   : > { %s513_s28 = sshll.u32 %s205_s23, 3  ;;  %550 = vmatprep.subr.bf16.mxu1 %v733_v11  ;;  %v514_v27 = vld [vmem:[%s917_s3] ss:$0 sm:$0xff]  ;;  %v516_v35 = vld [vmem:[%s917_s3 + $0x1] ss:$0 sm:$0xff]  ;;  %s512_s12 = sshll.u32 %s201_s11, 3 }
  0x39   : > { %s207_s6 = scalar_lea.vmem %s914_s0, %s513_s28  ;;  %v525_v49 = vld [vmem:[%s917_s3 + $0x2] ss:$0 sm:$0xff]  ;;  %v526_v51 = vld [vmem:[%s917_s3 + $0x3] ss:$0 sm:$0xff]  ;;  %s528_s23 = sshll.u32 %s782_s19, 7 }
  0x3a   : > { %v209_v0 = vld [vmem:[%s207_s6] sm:$0xff]  ;;  %s203_s28 = scalar_lea.vmem [#allocation5], %s512_s12  ;;  %s872_s27 = scalar_lea.hbm %s918_s4, %s528_s23 }
  0x3b   : > { %vm210_vm0 = vcmp.ne.f32.partialorder %v209_v0, %v209_v0  ;;  %551 = vmatpush3.bf16.msra.mxu1 %v623_v14  ;;  %s435_s5 = sshll.u32 %s203_s28, 4  ;;  %s422_s29 = scalar_lea.sflag [#allocation4], %s201_s11  ;;  %s874_s5 = int_to_ptr.vmem [resolvable:$true] %s435_s5 }
  0x3c   : > { %v211_v1 = vsel %vm210_vm0, 0.0, %v209_v0  ;;  %552 = vmatprep.subr.bf16.mxu1 %v733_v11  ;;  %s662_s7 = scalar_lea.vmem %s874_s5, 128  ;;  %s735_s19 = smov [#allocation5]  }
  0x3d   : > { %vm212_vm1 = vcmp.eq.f32.partialorder %v211_v1, inf  ;;  %p663_p6 = scmp.ne.s32.totalorder %s874_s5, %s662_s7  ;;  %s666_s8 = sshll.u32 %s735_s19, 4  ;;  %s667_s8 = int_to_ptr.vmem [resolvable:$false] %s666_s8 }
  0x3e   : > { %v213_v2 = vsel %vm212_vm1, 1.0, %v211_v1  ;;  %s668_s9 = scalar_lea.vmem %s667_s8, 256  ;;  %p669_p2 = scmp.lt.s32.totalorder %s874_s5, %s667_s8 }
  0x3f   : > { %vm214_vm3 = vcmp.eq.f32.partialorder %v213_v2, -inf  ;;  %553 = vmatpush3.bf16.msra.mxu1 %v624_v15  ;;  %p664_p10 = pnand %p663_p6, %p929_p9  ;;  %p670_p3 = scmp.lt.s32.totalorder %s668_s9, %s662_s7 }
  0x40   : > { %v215_v3 = vsel %vm214_vm3, -1.0, %v213_v2  ;;  %554 = vmatprep.subr.bf16.mxu1 %v733_v11 }
  0x41   : > { %v217_v4 = vsel %vm216_vm2, %v215_v3, 0.0  ;;  %p665_p12 = pneg %p664_p10  ;;  %p671_p4 = por %p670_p3, %p669_p2 }
  0x42   : > { %218 = vadd.xlane.f32.xlu0 %v217_v4 }
  0x43   : > { %555 = vmatpush3.bf16.msra.mxu1 %v625_v16  ;;  %p672_p7 = pnand %p671_p4, %p665_p12 }
  0x44   : > { %556 = vmatprep.subr.bf16.mxu1 %v733_v11 }
  0x47   : > { %557 = vmatpush3.bf16.msra.mxu1 %v626_v17 }
  0x48   : > { %558 = vmatprep.subr.bf16.mxu1 %v733_v11 }
  0x4b   : > { %559 = vmatpush3.bf16.msra.mxu1 %v627_v18 }
  0x4c   : > { %560 = vmatprep.subr.bf16.mxu1 %v733_v11 }
  0x4f   : > { %561 = vmatpush3.bf16.msra.mxu1 %v628_v25 }
  0x50   : > { %562 = vmatprep.subr.bf16.mxu1 %v733_v11 }
  0x53   : > { %563 = vmatpush3.bf16.msra.mxu1 %v629_v26 }
  0xcf   : > { %v219_v5 = vpop.xlane.xlu0 %218 }
  0xd0   : > { %v221_v6 = vmul.f32 0.16666667, %v219_v5 }
  0xd2   : > { %v222_v7 = vsub.f32 %v215_v3, %v221_v6 }
  0xd4   : > { %v223_v8 = vmul.f32 %v222_v7, %v222_v7 }
  0xd6   : > { %v224_v9 = vsel %vm216_vm2, %v223_v8, 0.0 }
  0xd7   : > { %225 = vadd.xlane.f32.xlu0 %v224_v9 }
 0x164   : > { %v226_v19 = vpop.xlane.xlu0 %225 }
 0x165   : > { %v227_v20 = vmul.f32 0.16666667, %v226_v19 }
 0x167   : > { %v228_v21 = vadd.f32 1e-05, %v227_v20 }
 0x169   : > { %630 = vrsqrt.f32 %v228_v21 }
 0x173   : > { %v631_v22 = vpop.eup %630 }
 0x174   : > { %v230_v23 = vmul.f32 %v631_v22, %v222_v7 }
 0x176   : > { %v231_v24 = vpack.c.bf16 %v230_v23, %v230_v23 }
 0x178   : > { %545 = vmatmul.mubr.msk.bf16.vlgmr.msra.gmra.mrb[0].mxu0 %vm216_vm2, %v231_v24 }
 0x24b   : > { %v279_v28 = vpop.f32.mrb[0].mxu0 }
 0x24c   : > { %v280_v29 = vadd.f32 %v514_v27, %v279_v28  ;;  %v546_v30 = vpop.f32.mrb[1].mxu0 }
 0x24d   : > { %v282_v31 = vpop.f32.mrb[2].mxu0 }
 0x24e   : > { %v285_v32 = vmax.f32 %v280_v29, 0.0  ;;  %v547_v33 = vpop.f32.mrb[3].mxu0 }
 0x250   : > { %v286_v34 = vpack.c.bf16 %v285_v32, %v285_v32 }
 0x252   : > { %565 = vmatmul.mubr.bf16.vlgmr.msra.gmra.mrb[0].mxu1 %v286_v34 }
 0x325   : > { %v390_v36 = vpop.f32.mrb[0].mxu1 }
 0x326   : > { %v391_v37 = vadd.f32 %v516_v35, %v390_v36  ;;  %v566_v38 = vpop.f32.mrb[1].mxu1 }
 0x327   : > { %v393_v39 = vpop.f32.mrb[2].mxu1 }
 0x328   : > { %396 = vadd.xlane.f32.xlu1 %v391_v37  ;;  %v567_v40 = vpop.f32.mrb[3].mxu1 }
 0x3b5   : > { %v397_v41 = vpop.xlane.xlu1 %396 }
 0x3b6   : > { %v399_v42 = vmul.f32 0.0078125, %v397_v41 }
 0x3b8   : > { %v400_v43 = vsub.f32 %v391_v37, %v399_v42 }
 0x3ba   : > { %v401_v44 = vmul.f32 %v400_v43, %v400_v43 }
 0x3bc   : > { %402 = vadd.xlane.f32.xlu1 %v401_v44 }
 0x449   : > { %v403_v45 = vpop.xlane.xlu1 %402 }
 0x44a   : > { %v404_v46 = vmul.f32 0.0078125, %v403_v45 }
 0x44c   : > { %v405_v47 = vadd.f32 1e-05, %v404_v46 }
 0x44e   : > { %632 = vrsqrt.f32 %v405_v47 }
 0x458   : > { %v633_v48 = vpop.eup %632 }
 0x459   : > { %v407_v50 = vmul.f32 %v633_v48, %v400_v43 }
 0x45b   : > { %v413_v52 = vmul.f32 %v525_v49, %v407_v50 }
 0x45d   : > { %v419_v53 = vadd.f32 %v526_v51, %v413_v52 }
 0x45f   : > { %420 = vst [vmem:[%s203_s28] sm:$0xff] %v419_v53 }
 0x460   : > { %675 = shalt.err (!%p672_p7)
}
 0x461   : > { %s676_s10 = scalar_lea.hbm %s872_s27, 128  ;;  %s680_s13 = scalar_lea.hbm %s918_s4, 256 }
 0x462   : > { %p677_p8 = scmp.ne.s32.totalorder %s872_s27, %s676_s10  ;;  %p681_p1 = scmp.lt.u32.totalorder %s872_s27, %s918_s4 }
 0x463   : > { %p682_p0 = scmp.lt.u32.totalorder %s680_s13, %s676_s10  ;;  %p684_p6 = scmp.lt.u32.totalorder %s676_s10, %s872_s27 }
 0x464   : > { %p678_p11 = pnand %p677_p8, %p929_p9 }
 0x465   : > { %p683_p5 = por %p682_p0, %p681_p1 }
 0x466   : > { %p679_p13 = pneg %p678_p11 }
 0x467   : > { %p685_p10 = por %p684_p6, %p683_p5 }
 0x469   : > { %p686_p12 = pnand %p685_p10, %p679_p13 }
 0x46b   : > { %689 = shalt.err (!%p686_p12)
}
 0x46c   : > { %572 = dma.vmem_to_hbm [thread:$0]  (%p929_p9), %s874_s5, 128, %s872_s27, %s422_s29  }
 0x46d PF: > { %p584_p2 = scmp.ge.s32.totalorder %s728_s18, 2  ;;  %s447_s22 = sand.u32 1, %s716_s15  }
 0x46e   : > { %p930_p3 = scmp.ne.s32.totalorder %s923_s26, 0  ;;  %s448_s23 = scalar_lea.sflag [#allocation4], %s447_s22 }
 0x470   : > { %p579_p4 = pnand %p584_p2, %p930_p3 }
 0x472   : > { %711 = dma.done.wait (!%p579_p4), %s448_s23, 128  }
 0x473   : > { %713 = vsyncadd (!%p579_p4), %s448_s23, 4294967168  ;;  %p15_p7 = scmp.ge.s32.totalorder %s786_s21, 4   ;;  %s931_s15 = smov %s720_s16 }
 0x474   : > { %s932_s16 = smov %s724_s17  ;;  %s933_s17 = smov %s797_s24 }
 0x475   : > { %s934_s18 = smov %s786_s21  ;;  %17 = sbr.rel (!%p15_p7) target bundleno = 4 (0x4), region = 76 }
 0x47c   :  { %453 = vsyncpa [#allocation3], 1 }
 0x47d   :  { %455 = vsyncpa [#allocation3 + $0x1], 1 }
 0x47e   :  { %456 = vsyncpa [#allocation4], 1 }
 0x47f   :  { %458 = vsyncpa [#allocation4 + $0x1], 1 }

</bundles_post_ra>
